<compile_context>
chip_gen: v5e
topology: v5e:2x2
jax: 0.10.0
libtpu: 0.0.40
codegen_flags: <defaults>
</compile_context>

<pallas_src>
import jax
import jax.numpy as jnp
from jax import lax
from jax.experimental import pallas as pl
from jax.experimental.pallas import tpu as pltpu


def _round_up(x, m):
    return (x + m - 1) // m * m


def emissions_kernel(bert_ref, rid_ref, pid_ref, wb_ref, rad_emit_ref,
                     pos_emit_ref, bias_ref, out_ref):
    # bert_ref:     (TILE_R, Hb)     bf16  — row tile of BERT hidden states
    # rid_ref:      (TILE_R, 1)      int32 — radical ids for this row tile
    # pid_ref:      (TILE_R, 1)      int32 — POS ids for this row tile
    # wb_ref:       (Hb, L_PAD)      bf16  — bert slice of hidden2label weight
    # rad_emit_ref: (NUM_RAD, L_PAD) bf16  — radical_table @ W_rad (pre-folded)
    # pos_emit_ref: (NUM_POS, L_PAD) bf16  — pos_table @ W_pos (pre-folded)
    # bias_ref:     (1, L_PAD)       f32
    # out_ref:      (TILE_R, L_PAD)  f32   — lane-dense emissions tile
    tile_r = bert_ref.shape[0]
    num_rad = rad_emit_ref.shape[0]
    num_pos = pos_emit_ref.shape[0]

    # Main projection: bert_emb @ W_bert  (bf16 operands, f32 accumulate).
    acc = jnp.dot(bert_ref[...], wb_ref[...],
                  preferred_element_type=jnp.float32)

    # Fused radical-embedding gather + projection via one-hot MXU matmul:
    # onehot(rid) @ (E_rad @ W_rad)  ==  E_rad[rid] @ W_rad.
    rad_oh = (rid_ref[...] ==
              lax.broadcasted_iota(jnp.int32, (tile_r, num_rad), 1)
              ).astype(jnp.bfloat16)
    acc = acc + jnp.dot(rad_oh, rad_emit_ref[...],
                        preferred_element_type=jnp.float32)

    # Same for the POS embedding.
    pos_oh = (pid_ref[...] ==
              lax.broadcasted_iota(jnp.int32, (tile_r, num_pos), 1)
              ).astype(jnp.bfloat16)
    acc = acc + jnp.dot(pos_oh, pos_emit_ref[...],
                        preferred_element_type=jnp.float32)

    # Bias add in f32 (native VPU path on all generations), lane-dense store.
    out_ref[...] = acc + bias_ref[...]


def fused_emissions(bert_emb, radical_ids, pos_ids, rad_table, pos_table, w, b):
    """emissions = concat([bert, E_rad[rid], E_pos[pid]], -1) @ w + b (Pallas).

    bert_emb: [B, S, Hb] f32/bf16   radical_ids/pos_ids: [B, S] int
    rad_table: [NUM_RAD, Hr]        pos_table: [NUM_POS, Hp]
    w: [Hb + Hr + Hp, L]            b: [L]
    """
    B, S, Hb = bert_emb.shape
    NR, Hr = rad_table.shape
    NP, Hp = pos_table.shape
    L = w.shape[-1]
    L_PAD = _round_up(max(L, 128), 128)   # lane-dense output (pad labels -> 128)

    # Split the hidden2label weight into its three concat groups.
    wb = w[:Hb]
    wr = w[Hb:Hb + Hr]
    wp = w[Hb + Hr:]

    # Pre-fold the tiny embedding tables through their weight slice (exact:
    # onehot @ (E @ W) == E[id] @ W).  Only int32 ids then cross into HBM.
    rad_emit = jnp.dot(rad_table.astype(jnp.float32), wr.astype(jnp.float32))
    pos_emit = jnp.dot(pos_table.astype(jnp.float32), wp.astype(jnp.float32))

    def pad_cols(x):
        return jnp.pad(x, ((0, 0), (0, L_PAD - L)))

    wb_p = pad_cols(wb.astype(jnp.float32)).astype(jnp.bfloat16)
    rad_emit_p = pad_cols(rad_emit).astype(jnp.bfloat16)
    pos_emit_p = pad_cols(pos_emit).astype(jnp.bfloat16)
    bias_p = jnp.pad(b.astype(jnp.float32), (0, L_PAD - L)).reshape(1, L_PAD)

    # Flatten (B, S) into one row axis; bf16 activations halve HBM read traffic.
    R = B * S
    bert2d = bert_emb.reshape(R, Hb).astype(jnp.bfloat16)
    rid2d = radical_ids.reshape(R, 1).astype(jnp.int32)
    pid2d = pos_ids.reshape(R, 1).astype(jnp.int32)

    # Row-tile choice: large tiles for HBM roofline, but keep >= 2 grid steps
    # when possible so v7x's two TensorCores both get work.
    R8 = _round_up(R, 8)
    if R8 >= 1024:
        tile_r = 512
    else:
        tile_r = max(8, _round_up(-(-R8 // 2), 8))
    R_pad = _round_up(R8, tile_r)
    if R_pad != R:
        bert2d = jnp.pad(bert2d, ((0, R_pad - R), (0, 0)))
        rid2d = jnp.pad(rid2d, ((0, R_pad - R), (0, 0)))
        pid2d = jnp.pad(pid2d, ((0, R_pad - R), (0, 0)))

    grid = (R_pad // tile_r,)

    out = pl.pallas_call(
        emissions_kernel,
        out_shape=jax.ShapeDtypeStruct((R_pad, L_PAD), jnp.float32),
        grid_spec=pltpu.PrefetchScalarGridSpec(
            num_scalar_prefetch=0,
            grid=grid,
            in_specs=[
                pl.BlockSpec((tile_r, Hb), lambda i: (i, 0)),     # bert rows
                pl.BlockSpec((tile_r, 1), lambda i: (i, 0)),      # radical ids
                pl.BlockSpec((tile_r, 1), lambda i: (i, 0)),      # pos ids
                pl.BlockSpec((Hb, L_PAD), lambda i: (0, 0)),      # W_bert (grid-invariant)
                pl.BlockSpec((NR, L_PAD), lambda i: (0, 0)),      # E_rad @ W_rad
                pl.BlockSpec((NP, L_PAD), lambda i: (0, 0)),      # E_pos @ W_pos
                pl.BlockSpec((1, L_PAD), lambda i: (0, 0)),       # bias
            ],
            out_specs=pl.BlockSpec((tile_r, L_PAD), lambda i: (i, 0)),
        ),
        compiler_params=pltpu.CompilerParams(
            dimension_semantics=("parallel",)),
    )(bert2d, rid2d, pid2d, wb_p, rad_emit_p, pos_emit_p, bias_p)

    return out[:R, :L].reshape(B, S, L)


def forward(params, input_ids, attention_mask, radical_features, pos_features):
    """JAX/Pallas port of ftmBERTfeatCRFModel.forward."""
    del attention_mask  # BERT stand-in does not need it (emissions are unmasked).
    # BERT stand-in: last_hidden_state := word-embedding lookup (glue, plain JAX).
    bert_emb = jnp.take(params["bert_word_emb"], input_ids, axis=0)   # [B,S,Hb]
    # Hot path: fused (embedding gathers + concat + hidden2label Linear) in Pallas.
    emissions = fused_emissions(
        bert_emb, radical_features, pos_features,
        params["radical_emb"], params["pos_emb"],
        params["hidden2label_w"], params["hidden2label_b"])
    return emissions


if __name__ == "__main__":
    # Small shapes consistent with the module (scaled down from 768/256/256).
    B, S = 2, 8
    HB, HR, HP = 32, 16, 16          # bert hidden, radical_emb_dim, pos_emb_dim
    NUM_LABELS = 8
    VOCAB, NUM_RADICALS, NUM_POS = 100, 20, 12

    key = jax.random.PRNGKey(0)
    keys = jax.random.split(key, 8)

    params = {
        "bert_word_emb": jax.random.normal(keys[0], (VOCAB, HB), jnp.float32) * 0.02,
        "radical_emb":   jax.random.normal(keys[1], (NUM_RADICALS, HR), jnp.float32) * 0.02,
        "pos_emb":       jax.random.normal(keys[2], (NUM_POS, HP), jnp.float32) * 0.02,
        # nn.Linear(HB+HR+HP, NUM_LABELS): stored here as [in, out] (i.e. W^T).
        "hidden2label_w": jax.random.normal(keys[3], (HB + HR + HP, NUM_LABELS),
                                            jnp.float32) * 0.05,
        "hidden2label_b": jax.random.normal(keys[4], (NUM_LABELS,), jnp.float32) * 0.05,
    }

    input_ids = jax.random.randint(keys[5], (B, S), 0, VOCAB, dtype=jnp.int32)
    attention_mask = jnp.ones((B, S), dtype=jnp.int32)
    radical_features = jax.random.randint(keys[6], (B, S), 0, NUM_RADICALS, dtype=jnp.int32)
    pos_features = jax.random.randint(keys[7], (B, S), 0, NUM_POS, dtype=jnp.int32)

    emissions = forward(params, input_ids, attention_mask,
                        radical_features, pos_features)
    emissions = jax.block_until_ready(emissions)

    # Reference check (plain JAX, f32): embedding lookups + concat + linear.
    bert_emb = jnp.take(params["bert_word_emb"], input_ids, axis=0)
    rad_emb = jnp.take(params["radical_emb"], radical_features, axis=0)
    pos_emb = jnp.take(params["pos_emb"], pos_features, axis=0)
    combined = jnp.concatenate([bert_emb, rad_emb, pos_emb], axis=-1)
    ref = combined @ params["hidden2label_w"] + params["hidden2label_b"]
    assert emissions.shape == (B, S, NUM_LABELS)
    # bf16 matmul operands (f32 accumulation) => loose-but-safe tolerance.
    assert jnp.allclose(emissions, ref, atol=2e-2, rtol=2e-2)

    print("KERNEL_OK")
</pallas_src>

<mosaic_0001>
module attributes {stable_mosaic.version = 11 : i64} {
  func.func @emissions_kernel(%arg0: i32, %arg1: memref<8x32xbf16, #tpu.memory_space<vmem>>, %arg2: memref<8x1xi32, #tpu.memory_space<vmem>>, %arg3: memref<8x1xi32, #tpu.memory_space<vmem>>, %arg4: memref<32x128xbf16, #tpu.memory_space<vmem>>, %arg5: memref<20x128xbf16, #tpu.memory_space<vmem>>, %arg6: memref<12x128xbf16, #tpu.memory_space<vmem>>, %arg7: memref<1x128xf32, #tpu.memory_space<vmem>>, %arg8: memref<8x128xf32, #tpu.memory_space<vmem>>) attributes {dimension_semantics = [#tpu.dimension_semantics<parallel>], iteration_bounds = array<i64: 2>, scalar_prefetch = 0 : i64, scratch_operands = 0 : i64, tpu.core_type = #tpu.core_type<tc>, window_params = [{transform_indices = @transform_0, window_bounds = array<i64: 8, 32>}, {transform_indices = @transform_1, window_bounds = array<i64: 8, 1>}, {transform_indices = @transform_2, window_bounds = array<i64: 8, 1>}, {pipeline_mode = #tpu.pipeline_mode<synchronous>, transform_indices = @transform_3, window_bounds = array<i64: 32, 128>}, {pipeline_mode = #tpu.pipeline_mode<synchronous>, transform_indices = @transform_4, window_bounds = array<i64: 20, 128>}, {pipeline_mode = #tpu.pipeline_mode<synchronous>, transform_indices = @transform_5, window_bounds = array<i64: 12, 128>}, {pipeline_mode = #tpu.pipeline_mode<synchronous>, transform_indices = @transform_6, window_bounds = array<i64: 1, 128>}, {transform_indices = @transform_7, window_bounds = array<i64: 8, 128>}]} {
    %c0 = arith.constant 0 : index
    %c0_0 = arith.constant 0 : index
    %0 = vector.load %arg1[%c0, %c0_0] : memref<8x32xbf16, #tpu.memory_space<vmem>>, vector<8x32xbf16>
    %c0_1 = arith.constant 0 : index
    %c0_2 = arith.constant 0 : index
    %1 = vector.load %arg4[%c0_1, %c0_2] : memref<32x128xbf16, #tpu.memory_space<vmem>>, vector<32x128xbf16>
    %cst = arith.constant dense<0.000000e+00> : vector<8x128xf32>
    %2 = tpu.matmul %0, %1, %cst {dimension_numbers = #tpu.dot_dimension_numbers<[1], [0], [0], [1], [0, 0, 1, 1], [], []>} : vector<8x32xbf16>, vector<32x128xbf16>, vector<8x128xf32> -> vector<8x128xf32>
    %c0_3 = arith.constant 0 : index
    %c0_4 = arith.constant 0 : index
    %3 = vector.load %arg2[%c0_3, %c0_4] : memref<8x1xi32, #tpu.memory_space<vmem>>, vector<8x1xi32>
    %4 = tpu.iota {dimensions = array<i32: 1>} : vector<8x20xi32>
    %5 = vector.broadcast %3 : vector<8x1xi32> to vector<8x20xi32>
    %6 = arith.cmpi eq, %5, %4 : vector<8x20xi32>
    %7 = arith.extui %6 : vector<8x20xi1> to vector<8x20xi32>
    %8 = arith.sitofp %7 : vector<8x20xi32> to vector<8x20xf32>
    %9 = arith.truncf %8 : vector<8x20xf32> to vector<8x20xbf16>
    %c0_5 = arith.constant 0 : index
    %c0_6 = arith.constant 0 : index
    %10 = vector.load %arg5[%c0_5, %c0_6] : memref<20x128xbf16, #tpu.memory_space<vmem>>, vector<20x128xbf16>
    %cst_7 = arith.constant dense<0.000000e+00> : vector<8x128xf32>
    %11 = tpu.matmul %9, %10, %cst_7 {dimension_numbers = #tpu.dot_dimension_numbers<[1], [0], [0], [1], [0, 0, 1, 1], [], []>} : vector<8x20xbf16>, vector<20x128xbf16>, vector<8x128xf32> -> vector<8x128xf32>
    %12 = arith.addf %2, %11 : vector<8x128xf32>
    %c0_8 = arith.constant 0 : index
    %c0_9 = arith.constant 0 : index
    %13 = vector.load %arg3[%c0_8, %c0_9] : memref<8x1xi32, #tpu.memory_space<vmem>>, vector<8x1xi32>
    %14 = tpu.iota {dimensions = array<i32: 1>} : vector<8x12xi32>
    %15 = vector.broadcast %13 : vector<8x1xi32> to vector<8x12xi32>
    %16 = arith.cmpi eq, %15, %14 : vector<8x12xi32>
    %17 = arith.extui %16 : vector<8x12xi1> to vector<8x12xi32>
    %18 = arith.sitofp %17 : vector<8x12xi32> to vector<8x12xf32>
    %19 = arith.truncf %18 : vector<8x12xf32> to vector<8x12xbf16>
    %c0_10 = arith.constant 0 : index
    %c0_11 = arith.constant 0 : index
    %20 = vector.load %arg6[%c0_10, %c0_11] : memref<12x128xbf16, #tpu.memory_space<vmem>>, vector<12x128xbf16>
    %cst_12 = arith.constant dense<0.000000e+00> : vector<8x128xf32>
    %21 = tpu.matmul %19, %20, %cst_12 {dimension_numbers = #tpu.dot_dimension_numbers<[1], [0], [0], [1], [0, 0, 1, 1], [], []>} : vector<8x12xbf16>, vector<12x128xbf16>, vector<8x128xf32> -> vector<8x128xf32>
    %22 = arith.addf %12, %21 : vector<8x128xf32>
    %c0_13 = arith.constant 0 : index
    %c0_14 = arith.constant 0 : index
    %23 = vector.load %arg7[%c0_13, %c0_14] : memref<1x128xf32, #tpu.memory_space<vmem>>, vector<1x128xf32>
    %24 = vector.broadcast %23 : vector<1x128xf32> to vector<8x128xf32>
    %25 = arith.addf %22, %24 : vector<8x128xf32>
    %c0_15 = arith.constant 0 : index
    %c0_16 = arith.constant 0 : index
    %26 = vector.load %arg8[%c0_15, %c0_16] : memref<8x128xf32, #tpu.memory_space<vmem>>, vector<8x128xf32>
    tpu.vector_store %arg8[%c0_15, %c0_16], %25 {strides = array<i32>} : memref<8x128xf32, #tpu.memory_space<vmem>>, vector<8x128xf32>,
    return
  }
  func.func @transform_0(%arg0: i32) -> (i32, i32) {
    %c0_i32 = arith.constant 0 : i32
    %c0_i32_0 = arith.constant 0 : i32
    return %arg0, %c0_i32 : i32, i32
  }
  func.func @transform_1(%arg0: i32) -> (i32, i32) {
    %c0_i32 = arith.constant 0 : i32
    %c0_i32_0 = arith.constant 0 : i32
    return %arg0, %c0_i32 : i32, i32
  }
  func.func @transform_2(%arg0: i32) -> (i32, i32) {
    %c0_i32 = arith.constant 0 : i32
    %c0_i32_0 = arith.constant 0 : i32
    return %arg0, %c0_i32 : i32, i32
  }
  func.func @transform_3(%arg0: i32) -> (i32, i32) {
    %c0_i32 = arith.constant 0 : i32
    %c0_i32_0 = arith.constant 0 : i32
    %c0_i32_1 = arith.constant 0 : i32
    return %c0_i32, %c0_i32_0 : i32, i32
  }
  func.func @transform_4(%arg0: i32) -> (i32, i32) {
    %c0_i32 = arith.constant 0 : i32
    %c0_i32_0 = arith.constant 0 : i32
    %c0_i32_1 = arith.constant 0 : i32
    return %c0_i32, %c0_i32_0 : i32, i32
  }
  func.func @transform_5(%arg0: i32) -> (i32, i32) {
    %c0_i32 = arith.constant 0 : i32
    %c0_i32_0 = arith.constant 0 : i32
    %c0_i32_1 = arith.constant 0 : i32
    return %c0_i32, %c0_i32_0 : i32, i32
  }
  func.func @transform_6(%arg0: i32) -> (i32, i32) {
    %c0_i32 = arith.constant 0 : i32
    %c0_i32_0 = arith.constant 0 : i32
    %c0_i32_1 = arith.constant 0 : i32
    return %c0_i32, %c0_i32_0 : i32, i32
  }
  func.func @transform_7(%arg0: i32) -> (i32, i32) {
    %c0_i32 = arith.constant 0 : i32
    %c0_i32_0 = arith.constant 0 : i32
    return %arg0, %c0_i32 : i32, i32
  }
}

</mosaic_0001>

<bundles_post_ra>
// kernel: tpu_custom_call.1
= control target key start
LH: loop header
LB: loop body
LE: loop exit
PB: predicated region body
PF: predicated region fallthrough
CT: control target
= control target key end

     0   :  { %12 = vsyncpa [#allocation3], 0  ;;  %s947_s0 = inlined_call_operand.hbm [shape: bf16[16,32], index: 0, kind: input, shape index: {}]   ;;  %s948_s1 = inlined_call_operand.vmem [shape: s32[16,1], index: 1, kind: input, shape index: {}]   ;;  %s949_s2 = inlined_call_operand.vmem [shape: s32[16,1], index: 2, kind: input, shape index: {}]   ;;  %s950_s3 = inlined_call_operand.vmem [shape: bf16[32,128], index: 3, kind: input, shape index: {}]   ;;  %s951_s4 = inlined_call_operand.vmem [shape: bf16[20,128], index: 4, kind: input, shape index: {}]   ;;  %s952_s5 = inlined_call_operand.vmem [shape: bf16[12,128], index: 5, kind: input, shape index: {}]   ;;  %s953_s6 = inlined_call_operand.vmem [shape: f32[1,128], index: 6, kind: input, shape index: {}]   ;;  %s954_s7 = inlined_call_operand.hbm [shape: f32[16,128], index: 7, kind: output, shape index: {}]  }
   0x1   :  { %14 = vsyncpa [#allocation3 + $0x1], 0 }
   0x2   :  { %15 = vsyncpa [#allocation4], 0 }
   0x3   :  { %17 = vsyncpa [#allocation4 + $0x1], 0  ;;  %s790_s24 = smov 0   ;;  %s792_s25 = smov 0  }
   0x4   :  { %s794_s26 = smov 0   ;;  %s796_s27 = smov 0  }
   0x5 LB: > { %s811_s28 = sadd.s32 4294967295, %s746_s27   ;;  %s561_s29 = sadd.s32 4294967294, %s746_s27   ;;  %s746_s27 = sphi %s796_s27, %s966_s27   ;;  %s742_s26 = sphi %s794_s26, %s965_s26   ;;  %s738_s25 = sphi %s792_s25, %s964_s25   ;;  %s734_s24 = sphi %s790_s24, %s963_s24  }
   0x6   : > { %s815_s30 = sadd.s32 1, %s746_s27   ;;  %s30_s8 = sadd.s32 1, %s742_s26 }
   0x7   : > { %s27_s9 = ssub.s32 %s746_s27, %s815_s30  ;;  %p37_p0 = scmp.ne.s32.totalorder %s742_s26, %s738_s25 }
   0x8   : > { %p28_p1 = scmp.eq.s32.totalorder %s27_s9, 0  ;;  %p38_p2 = scmp.eq.s32.totalorder %s746_s27, 0 }
   0x9   : > { %p43_p3 = scmp.ne.s32.totalorder %s738_s25, %s734_s24  ;;  %p44_p4 = scmp.eq.s32.totalorder %s811_s28, 0 }
   0xa   : > { %s827_s10 = scalar_select %p28_p1, %s742_s26, %s30_s8  }
   0xb   : > { %p829_p5 = por %p38_p2, %p37_p0  ;;  %p833_p6 = por %p44_p4, %p43_p3 }
   0xc   : > { %955 = sst [smem:[#allocation8_spill]] %s827_s10  ;;  %p203_p7 = scmp.eq.s32.totalorder %s811_s28, 1 }
   0xd   : > { %p209_p8 = scmp.eq.s32.totalorder %s561_s29, 1  ;;  %p612_p10 = scmp.lt.s32.totalorder %s746_s27, 2 }
   0xe   : > { %p840_p11 = por %p203_p7, %p37_p0  ;;  %s241_s15 = sand.u32 1, %s742_s26  }
   0xf   : > { %p844_p12 = por %p209_p8, %p43_p3  ;;  %s565_s16 = sshll.u32 %s746_s27, 2 }
  0x10   : > { %s564_s17 = sshll.u32 %s241_s15, 2  ;;  %s249_s20 = scalar_lea.hbm %s947_s0, %s565_s16 }
  0x11   : > { %s251_s21 = sshll.u32 %s249_s20, 4  ;;  %s245_s22 = scalar_lea.vmem [#allocation2], %s564_s17  ;;  %s252_s21 = int_to_ptr.hbm [resolvable:$true] %s251_s21 }
  0x12   : > { %s253_s23 = sshll.u32 %s245_s22, 4  ;;  %p855_p13 = pnand %p612_p10, %p829_p5  ;;  %s254_s23 = int_to_ptr.vmem [resolvable:$true] %s253_s23 }
  0x13   : > { %p566_p0 = scmp.ge.s32.totalorder %s746_s27, 1  ;;  %p272_p1 = scmp.lt.s32.totalorder %s746_s27, 3 }
  0x14   : > { %s242_s8 = scalar_lea.sflag [#allocation3], %s241_s15  ;;  %s650_s9 = sshra.s32 %s252_s21, 4  ;;  %s651_s9 = int_to_ptr.hbm [resolvable:$true] %s650_s9 }
  0x15   : > { %s652_s10 = scalar_lea.hbm %s651_s9, 4  ;;  %p654_p3 = pneg %p855_p13 }
  0x16   : > { %p653_p2 = scmp.ne.s32.totalorder %s651_s9, %s652_s10  ;;  %s657_s11 = scalar_lea.hbm %s947_s0, 8 }
  0x17   : > { %p658_p5 = scmp.lt.s32.totalorder %s651_s9, %s947_s0  ;;  %p659_p8 = scmp.lt.s32.totalorder %s657_s11, %s652_s10 }
  0x18   : > { %p655_p4 = pnand %p654_p3, %p653_p2 }
  0x19   : > { %p660_p10 = por %p659_p8, %p658_p5 }
  0x1a   : > { %p656_p7 = pneg %p655_p4 }
  0x1c   : > { %p661_p9 = pnand %p660_p10, %p656_p7 }
  0x1e   : > { %664 = shalt.err (!%p661_p9)
}
  0x1f   : > { %607 = dma.hbm_to_vmem [thread:$0]  (!%p855_p13), %s252_s21, 64, %s254_s23, %s242_s8  }
  0x20   : > { %p273_p2 = pnand %p566_p0, %p272_p1 }
  0x21   : > { %s876_s15 = sand.u32 (!%p273_p2), 1, %s738_s25  }
  0x22   : > { %276 = sbr.rel (%p273_p2) target bundleno = 310 (0x136), region = 48  ;;  %s567_s20 = sshll.u32 (!%p273_p2), %s876_s15, 2 }
  0x23   : > { %s279_s10 = scalar_lea.sflag (!%p273_p2), [#allocation3], %s876_s15  ;;  %s282_s22 = scalar_lea.vmem (!%p273_p2), [#allocation2], %s567_s20 }
  0x27   : > { %725 = dma.done.wait (%p833_p6), %s279_s10, 64  }
  0x28   : > { %727 = vsyncadd (%p833_p6), %s279_s10, 4294967232  ;;  %p322_p9 = scmp.lt.s32.totalorder %s811_s28, 1  ;;  %v748_v0 = vmov 0   ;;  %v597_v2 = vld [vmem:[%s950_s3 + $0x8] sm:$0xff]  ;;  %v589_v4 = vld [vmem:[%s952_s5] sm:$0xf]  ;;  %v337_v15 = vlaneseq }
  0x29   : > { %648 = vset.pattern.permute.xlu0 %v748_v0  ;;  %401 = vmatpush.bf16.msra.mxu1 %v597_v2  ;;  %v599_v5 = vld [vmem:[%s952_s5] sm:$0x30]  ;;  %vm427_vm0 = vcmask 1045504   ;;  %v348_v8 = vld [vmem:[%s951_s4 + $0x8] sm:$0x3]  ;;  %vm391_vm1 = vcmask 261120  }
  0x2a   : > { %s323_s21 = scalar_select %p322_p9, %s811_s28, 1  ;;  %v590_v6 = vor.u32 %v599_v5, %v589_v4  ;;  %v596_v7 = vld [vmem:[%s950_s3] sm:$0xff]  ;;  %v354_v10 = vunpack.c.l.b16 %v348_v8  ;;  %vm362_vm2 = vcmask 1041408   ;;  %v338_v16 = vand.u32 127, %v337_v15 }
  0x2b   : > { %v331_v11 = vld [vmem:[%s282_s22] sm:$0xf]  ;;  %v749_v18 = vmov 0.0   ;;  %vm423_vm4 = vcmask 97280   ;;  %vm358_vm6 = vcmask 162816   ;;  %s568_s22 = sshll.u32 %s876_s15, 3 }
  0x2c   : > { %s569_s23 = sshll.u32 %s323_s21, 3  ;;  %v429_v9 = vsel %vm427_vm0, %v590_v6, 0  ;;  %v356_v12 = vpack.c.b16 %v354_v10, %v354_v10  ;;  %v598_v14 = vld [vmem:[%s951_s4] sm:$0xff]  ;;  %s593_s12 = sshll.u32 %s811_s28, 3 }
  0x2d   : > { %s329_s9 = scalar_lea.vmem %s949_s2, %s569_s23  ;;  %s325_s18 = scalar_lea.vmem %s948_s1, %s569_s23  ;;  %402 = vmatpush.bf16.msra.mxu1 %v596_v7  ;;  %438 = vmatpush.bf16.msra.mxu2 %v429_v9  ;;  %v649_v29 = vld [vmem:[%s953_s6] ss:$0 sm:$0xff] }
  0x2e   : > { %v408_v1 = vld [vmem:[%s329_s9] sm:$0xff]  ;;  %v364_v13 = vsel %vm362_vm2, %v356_v12, 0  ;;  %s462_s19 = scalar_lea.hbm %s954_s7, %s593_s12  ;;  %s321_s21 = scalar_lea.vmem [#allocation5], %s568_s22 }
  0x2f   : > { %410 = vperm.xlu0 %648, %v408_v1   ;;  %v336_v3 = vld [vmem:[%s325_s18] sm:$0xff]  ;;  %372 = vmatpush.bf16.msra.mxu0 %v364_v13  ;;  %s464_s29 = sshll.u32 %s321_s21, 4  ;;  %s466_s8 = sshll.u32 %s462_s19, 4  ;;  %s465_s29 = int_to_ptr.vmem [resolvable:$true] %s464_s29  ;;  %s467_s8 = int_to_ptr.hbm [resolvable:$true] %s466_s8 }
  0x30   : > { %585 = vmatmul.msk.bf16.vlgmr.msra.gmra.mxu1 %vm391_vm1, %v331_v11  ;;  %s452_s28 = scalar_lea.sflag [#allocation4], %s876_s15  ;;  %s694_s9 = sshra.s32 %s467_s8, 4  ;;  %s695_s9 = int_to_ptr.hbm [resolvable:$true] %s694_s9 }
  0x31   : > { %s696_s16 = scalar_lea.hbm %s695_s9, 8  ;;  %s700_s22 = scalar_lea.hbm %s954_s7, 16 }
  0x32   : > { %p697_p6 = scmp.ne.s32.totalorder %s695_s9, %s696_s16  ;;  %p701_p1 = scmp.lt.s32.totalorder %s695_s9, %s954_s7 }
  0x33   : > { %373 = vmatpush.bf16.msra.mxu0 %v598_v14  ;;  %p702_p3 = scmp.lt.s32.totalorder %s700_s22, %s696_s16 }
  0x34   : > { %p698_p13 = pnand %p697_p6, %p840_p11 }
  0x35   : > { %p703_p4 = por %p702_p3, %p701_p1 }
  0x36   : > { %p699_p0 = pneg %p698_p13 }
  0x37   : > { %340 = vperm.xlu0 %648, %v336_v3  }
  0x38   : > { %p704_p7 = pnand %p703_p4, %p699_p0 }
  0xa1   : > { %v411_v17 = vpop.permute.xlu0 %410 }
  0xa2   : > { %vm412_vm3 = vcmp.eq.s32.totalorder %v411_v17, %v338_v16 }
  0xa3   : > { %v586_v19 = vsel %vm412_vm3, 1.0, %v749_v18 }
  0xa4   : > { %v415_v20 = vpack.c.bf16 %v586_v19, %v586_v19 }
  0xa6   : > { %591 = vmatmul.msk.bf16.vlgmr.msra.gmra.mxu2 %vm423_vm4, %v415_v20 }
  0xa9   : > { %v341_v21 = vpop.permute.xlu0 %340 }
  0xaa   : > { %vm342_vm5 = vcmp.eq.s32.totalorder %v341_v21, %v338_v16 }
  0xab   : > { %v571_v22 = vsel %vm342_vm5, 1.0, %v749_v18 }
  0xac   : > { %v345_v23 = vpack.c.bf16 %v571_v22, %v571_v22 }
  0xad   : > { %v404_v24 = vpop.f32.mrf.mxu1 }
  0xae   : > { %576 = vmatmul.msk.bf16.vlgmr.msra.gmra.mxu0 %vm358_vm6, %v345_v23 }
  0xb5   : > { %v406_v25 = vpop.f32.mrf.mxu1 }
 0x129   : > { %v440_v26 = vpop.f32.mrf.mxu2 }
 0x12b   : > { %v375_v27 = vpop.f32.mrf.mxu0 }
 0x12c   : > { %v405_v28 = vadd.f32 %v404_v24, %v375_v27 }
 0x12e   : > { %v444_v30 = vadd.f32 %v440_v26, %v405_v28 }
 0x130   : > { %v449_v31 = vadd.f32 %v649_v29, %v444_v30 }
 0x131   : > { %v442_v32 = vpop.f32.mrf.mxu2 }
 0x132   : > { %450 = vst [vmem:[%s321_s21] sm:$0xff] %v449_v31 }
 0x133   : > { %v377_v33 = vpop.f32.mrf.mxu0 }
 0x134   : > { %707 = shalt.err (!%p704_p7)
}
 0x135   : > { %602 = dma.vmem_to_hbm [thread:$0]  (%p840_p11), %s465_s29, 128, %s467_s8, %s452_s28  }
 0x136 PF: > { %s478_s15 = sand.u32 1, %s734_s24   ;;  %p961_p5 = scmp.ge.s32.totalorder %s746_s27, 2 }
 0x137   : > { %s479_s18 = scalar_lea.sflag [#allocation4], %s478_s15 }
 0x138   : > { %p609_p8 = pnand %p961_p5, %p844_p12 }
 0x13a   : > { %p610_p10 = pneg %p609_p8 }
 0x13c   : > { %729 = dma.done.wait (%p610_p10), %s479_s18, 128  }
 0x13d   : > { %731 = vsyncadd (%p610_p10), %s479_s18, 4294967168  ;;  %s962_s19 = sld [smem:[#allocation8_spill]]  ;;  %p20_p2 = scmp.ge.s32.totalorder %s815_s30, 4  }
 0x13e   : > { %s963_s24 = smov %s738_s25  ;;  %s964_s25 = smov %s742_s26 }
 0x13f   : > { %s966_s27 = smov %s815_s30  ;;  %22 = sbr.rel (!%p20_p2) target bundleno = 5 (0x5), region = 99 }
 0x143   : > { %s965_s26 = smov %s962_s19 }
 0x144   :  { %485 = vsyncpa [#allocation3], 1 }
 0x145   :  { %487 = vsyncpa [#allocation3 + $0x1], 1 }
 0x146   :  { %488 = vsyncpa [#allocation4], 1 }
 0x147   :  { %490 = vsyncpa [#allocation4 + $0x1], 1 }

</bundles_post_ra>
